<compile_context>
chip_gen: v7x
topology: tpu7x:2x2x1
jax: 0.10.0
libtpu: 0.0.40
codegen_flags: <defaults>
</compile_context>

<pallas_src>
import functools

import jax
import jax.numpy as jnp
from jax.experimental import pallas as pl
from jax.experimental.pallas import tpu as pltpu


def _round_up(a, b):
    return (a + b - 1) // b * b


def _dwconv1d_kernel(x_ref, w_ref, b_ref, o_ref, *scratch,
                     mult, K, padding, L, L_out, P0):
    # x_ref : (TC, L)             input-channel tile, original dtype
    # w_ref : (K, mult, TC, 1)    f32, w_ref[k, m, ci, 0] = weight[ci*mult + m, 0, k]
    # b_ref : (mult, TC, 1)       f32, b_ref[m, ci, 0]    = bias[ci*mult + m]
    # o_ref : (TC, mult * L_out)  output slab, m-major along lanes per channel row
    # scratch: () if padding == 0, else (xs_ref,) with xs_ref (TC, Lw) f32 staging
    TC = x_ref.shape[0]

    if padding > 0:
        xs_ref, = scratch
        Lw = xs_ref.shape[1]
        # Tiny zero halo strips (prefix [0, P0) is lane-aligned; tail strip is small).
        xs_ref[:, 0:P0] = jnp.zeros((TC, P0), jnp.float32)
        xs_ref[:, P0 + L:Lw] = jnp.zeros((TC, Lw - P0 - L), jnp.float32)
        # Main body store starts at a 128-multiple offset -> plain vst, not vst.msk.
        xs_ref[:, P0:P0 + L] = x_ref[...].astype(jnp.float32)
        base = P0 - padding          # tap k reads xs[:, base+k : base+k+L_out]

        def tap(k):
            return xs_ref[:, base + k: base + k + L_out]
    else:
        # No zero halo needed: every tap is a plain static slice of the input tile.
        def tap(k):
            sl = x_ref[:, k:k + L_out] if (k or L_out != L) else x_ref[...]
            return sl.astype(jnp.float32)

    # k-outer / m-inner: one tap slab live at a time, reused across the mult outputs.
    accs = [None] * mult
    for k in range(K):
        slab = tap(k)                                   # (TC, L_out) f32
        for m in range(mult):
            term = slab * w_ref[k, m]                   # (TC, 1) lane-splat, f32
            accs[m] = (term + b_ref[m]) if k == 0 else (accs[m] + term)

    for m in range(mult):
        o_ref[:, m * L_out:(m + 1) * L_out] = accs[m].astype(o_ref.dtype)


def _vmem_params():
    """Generation-aware (budget, vmem_limit_bytes): query VMEM capacity when possible."""
    cap = None
    try:
        info = pltpu.get_tpu_info()
        for attr in ("vmem_capacity_bytes", "vmem_size_bytes", "vmem_bytes"):
            cap = getattr(info, attr, None)
            if cap:
                break
    except Exception:
        cap = None
    if not cap:
        cap = 64 * 1024 * 1024                      # conservative: v7x per-core VMEM
    vmem_limit = int(min(cap // 2, 64 * 1024 * 1024))   # scoped VMEM we request
    budget = int(min(cap // 4, 24 * 1024 * 1024))       # per-step working-set target
    return budget, vmem_limit


def _pick_channel_tile(c_in, L, Lw, L_out, mult, itemsize, budget):
    """Largest legal channel tile whose per-step VMEM working set fits `budget`.
    Legal tiles: multiples of 8 dividing C_in, or the full C_in dimension.  Every
    candidate (including the full-C_in fallback) is budget-checked."""
    def footprint(tc):
        xin = 2 * tc * L * itemsize                 # double-buffered input block
        outb = 2 * tc * mult * L_out * itemsize     # double-buffered output block
        scr = tc * Lw * 4                           # f32 staging scratch (0 if no pad)
        regs = (mult + 2) * tc * L_out * 4          # live accumulators + tap headroom
        return xin + outb + scr + regs

    cands = [d for d in range(8, c_in + 1, 8) if c_in % d == 0]
    if itemsize < 4:                                # packed dtypes: prefer 16-row tiles
        cands = [d for d in cands if d % 16 == 0] or cands
    cands = cands + [c_in]                          # full dim is always a legal block
    fitting = [d for d in cands if footprint(d) <= budget]
    if fitting:
        return max(fitting)
    return min(cands)                               # best effort (see TODO at top)


def depthwise_conv1d(x, weight, bias, padding):
    """x: (N, C_in, L), weight: (C_out, 1, K), bias: (C_out,). groups = C_in."""
    N, C_in, L = x.shape
    C_out, _, K = weight.shape
    assert C_out % C_in == 0
    mult = C_out // C_in

    # Rare case 2*padding > K-1 (L_out would exceed L): normalize by padding once on
    # the host so the in-kernel tap construction never widens past the input tile.
    if 2 * padding > K - 1:
        x = jnp.pad(x, ((0, 0), (0, 0), (padding, padding)))
        L = L + 2 * padding
        padding = 0

    L_out = L + 2 * padding - K + 1
    assert 0 < L_out <= L

    # Lane-aligned base offset for the staged copy (plain vst) and staging width.
    if padding > 0:
        P0 = _round_up(padding, 128)
        Lw = P0 + _round_up(L + padding, 128)
    else:
        P0 = 0
        Lw = 0

    budget, vmem_limit = _vmem_params()
    TC = _pick_channel_tile(C_in, L, Lw, L_out, mult, x.dtype.itemsize, budget)
    nc = C_in // TC

    # Tiny parameter repacks, already f32 so the kernel loop has no per-tap casts:
    #   w_r[k, m, ci, 0] = weight[ci*mult + m, 0, k];  b_r[m, ci, 0] = bias[ci*mult + m]
    w_r = (weight[:, 0, :].astype(jnp.float32)
           .reshape(C_in, mult, K).transpose(2, 1, 0)[..., None])
    b_r = bias.astype(jnp.float32).reshape(C_in, mult).T[..., None]

    kernel = functools.partial(_dwconv1d_kernel, mult=mult, K=K, padding=padding,
                               L=L, L_out=L_out, P0=P0)
    scratch_shapes = [pltpu.VMEM((TC, Lw), jnp.float32)] if padding > 0 else []

    out = pl.pallas_call(
        kernel,
        out_shape=jax.ShapeDtypeStruct((N, C_in, mult * L_out), x.dtype),
        # Channel blocks outer, batch inner: the weight/bias block index is constant
        # across the inner N steps, so their DMAs are issued once per channel block.
        grid=(nc, N),
        in_specs=[
            pl.BlockSpec((None, TC, L), lambda c, n: (n, c, 0)),
            pl.BlockSpec((K, mult, TC, 1), lambda c, n: (0, 0, c, 0)),
            pl.BlockSpec((mult, TC, 1), lambda c, n: (0, c, 0)),
        ],
        out_specs=pl.BlockSpec((None, TC, mult * L_out), lambda c, n: (n, c, 0)),
        scratch_shapes=scratch_shapes,
        compiler_params=pltpu.CompilerParams(
            dimension_semantics=("parallel", "parallel"),
            vmem_limit_bytes=vmem_limit),
    )(x, w_r, b_r)

    # (N, C_in, mult*L_out) -> (N, C_out, L_out): contiguous reshape, co = ci*mult + m,
    # matching PyTorch's grouped-conv output-channel ordering.
    return out.reshape(N, C_out, L_out)


if __name__ == "__main__":
    # Module config (small, consistent with DepthwiseConv1d(in, out, kernel, padding)).
    in_channels, out_channels, kernel_size, padding = 4, 8, 3, 1
    batch, length = 2, 16

    key = jax.random.PRNGKey(0)
    kx, kw, kb = jax.random.split(key, 3)

    # Conv1d weight shape: (C_out, C_in/groups, K) = (C_out, 1, K).
    x = jax.random.normal(kx, (batch, in_channels, length), dtype=jnp.float32)
    weight = jax.random.normal(kw, (out_channels, 1, kernel_size), dtype=jnp.float32) * 0.1
    bias = jax.random.normal(kb, (out_channels,), dtype=jnp.float32) * 0.1

    def ref_conv(x, w, b, pad):
        return jax.lax.conv_general_dilated(
            x, w, window_strides=(1,), padding=[(pad, pad)],
            dimension_numbers=("NCH", "OIH", "NCH"),
            feature_group_count=x.shape[1]) + b[None, :, None]

    # Padded path (uses the aligned staging scratch).
    out = jax.block_until_ready(depthwise_conv1d(x, weight, bias, padding))
    ref = ref_conv(x, weight, bias, padding)
    assert out.shape == ref.shape, (out.shape, ref.shape)
    assert jnp.max(jnp.abs(out - ref)) < 1e-5

    # Scratch-free path (padding == 0).
    out0 = jax.block_until_ready(depthwise_conv1d(x, weight, bias, 0))
    ref0 = ref_conv(x, weight, bias, 0)
    assert out0.shape == ref0.shape, (out0.shape, ref0.shape)
    assert jnp.max(jnp.abs(out0 - ref0)) < 1e-5

    print("KERNEL_OK")
</pallas_src>

<mosaic_0001>
module attributes {stable_mosaic.version = 11 : i64} {
  func.func @_dwconv1d_kernel(%arg0: i32, %arg1: i32, %arg2: memref<1x4x16xf32, #tpu.memory_space<vmem>>, %arg3: memref<3x2x4x1xf32, #tpu.memory_space<vmem>>, %arg4: memref<2x4x1xf32, #tpu.memory_space<vmem>>, %arg5: memref<1x4x32xf32, #tpu.memory_space<vmem>>, %arg6: memref<4x256xf32, #tpu.memory_space<vmem>>) attributes {dimension_semantics = [#tpu.dimension_semantics<parallel>, #tpu.dimension_semantics<parallel>], iteration_bounds = array<i64: 1, 2>, scalar_prefetch = 0 : i64, scratch_operands = 1 : i64, tpu.core_type = #tpu.core_type<tc>, window_params = [{transform_indices = @transform_0, window_bounds = array<i64: 1, 4, 16>}, {transform_indices = @transform_1, window_bounds = array<i64: 3, 2, 4, 1>}, {transform_indices = @transform_2, window_bounds = array<i64: 2, 4, 1>}, {transform_indices = @transform_3, window_bounds = array<i64: 1, 4, 32>}]} {
    %cst = arith.constant 0.000000e+00 : f32
    %0 = vector.broadcast %cst : f32 to vector<4x128xf32>
    %c0 = arith.constant 0 : index
    %c0_0 = arith.constant 0 : index
    %1 = vector.load %arg6[%c0, %c0_0] : memref<4x256xf32, #tpu.memory_space<vmem>>, vector<4x128xf32>
    tpu.vector_store %arg6[%c0, %c0_0], %0 {strides = array<i32>} : memref<4x256xf32, #tpu.memory_space<vmem>>, vector<4x128xf32>,
    %cst_1 = arith.constant 0.000000e+00 : f32
    %2 = vector.broadcast %cst_1 : f32 to vector<4x112xf32>
    %c0_2 = arith.constant 0 : index
    %c144 = arith.constant 144 : index
    %3 = vector.load %arg6[%c0_2, %c144] : memref<4x256xf32, #tpu.memory_space<vmem>>, vector<4x112xf32>
    tpu.vector_store %arg6[%c0_2, %c144], %2 {strides = array<i32>} : memref<4x256xf32, #tpu.memory_space<vmem>>, vector<4x112xf32>,
    %c0_3 = arith.constant 0 : index
    %c0_4 = arith.constant 0 : index
    %c0_5 = arith.constant 0 : index
    %4 = vector.load %arg2[%c0_3, %c0_4, %c0_5] : memref<1x4x16xf32, #tpu.memory_space<vmem>>, vector<1x4x16xf32>
    %5 = vector.shape_cast %4 : vector<1x4x16xf32> to vector<4x16xf32>
    %c0_6 = arith.constant 0 : index
    %c128 = arith.constant 128 : index
    %6 = vector.load %arg6[%c0_6, %c128] : memref<4x256xf32, #tpu.memory_space<vmem>>, vector<4x16xf32>
    tpu.vector_store %arg6[%c0_6, %c128], %5 {strides = array<i32>} : memref<4x256xf32, #tpu.memory_space<vmem>>, vector<4x16xf32>,
    %c0_7 = arith.constant 0 : index
    %c127 = arith.constant 127 : index
    %7 = vector.load %arg6[%c0_7, %c127] : memref<4x256xf32, #tpu.memory_space<vmem>>, vector<4x16xf32>
    %c0_8 = arith.constant 0 : index
    %c0_9 = arith.constant 0 : index
    %c0_10 = arith.constant 0 : index
    %c0_11 = arith.constant 0 : index
    %8 = vector.load %arg3[%c0_8, %c0_9, %c0_10, %c0_11] : memref<3x2x4x1xf32, #tpu.memory_space<vmem>>, vector<1x1x4x1xf32>
    %9 = vector.shape_cast %8 : vector<1x1x4x1xf32> to vector<4x1xf32>
    %10 = vector.broadcast %9 : vector<4x1xf32> to vector<4x16xf32>
    %11 = arith.mulf %7, %10 : vector<4x16xf32>
    %c0_12 = arith.constant 0 : index
    %c0_13 = arith.constant 0 : index
    %c0_14 = arith.constant 0 : index
    %12 = vector.load %arg4[%c0_12, %c0_13, %c0_14] : memref<2x4x1xf32, #tpu.memory_space<vmem>>, vector<1x4x1xf32>
    %13 = vector.shape_cast %12 : vector<1x4x1xf32> to vector<4x1xf32>
    %14 = vector.broadcast %13 : vector<4x1xf32> to vector<4x16xf32>
    %15 = arith.addf %11, %14 : vector<4x16xf32>
    %c0_15 = arith.constant 0 : index
    %c1 = arith.constant 1 : index
    %c0_16 = arith.constant 0 : index
    %c0_17 = arith.constant 0 : index
    %16 = vector.load %arg3[%c0_15, %c1, %c0_16, %c0_17] : memref<3x2x4x1xf32, #tpu.memory_space<vmem>>, vector<1x1x4x1xf32>
    %17 = vector.shape_cast %16 : vector<1x1x4x1xf32> to vector<4x1xf32>
    %18 = vector.broadcast %17 : vector<4x1xf32> to vector<4x16xf32>
    %19 = arith.mulf %7, %18 : vector<4x16xf32>
    %c1_18 = arith.constant 1 : index
    %c0_19 = arith.constant 0 : index
    %c0_20 = arith.constant 0 : index
    %20 = vector.load %arg4[%c1_18, %c0_19, %c0_20] : memref<2x4x1xf32, #tpu.memory_space<vmem>>, vector<1x4x1xf32>
    %21 = vector.shape_cast %20 : vector<1x4x1xf32> to vector<4x1xf32>
    %22 = vector.broadcast %21 : vector<4x1xf32> to vector<4x16xf32>
    %23 = arith.addf %19, %22 : vector<4x16xf32>
    %c0_21 = arith.constant 0 : index
    %c128_22 = arith.constant 128 : index
    %24 = vector.load %arg6[%c0_21, %c128_22] : memref<4x256xf32, #tpu.memory_space<vmem>>, vector<4x16xf32>
    %c1_23 = arith.constant 1 : index
    %c0_24 = arith.constant 0 : index
    %c0_25 = arith.constant 0 : index
    %c0_26 = arith.constant 0 : index
    %25 = vector.load %arg3[%c1_23, %c0_24, %c0_25, %c0_26] : memref<3x2x4x1xf32, #tpu.memory_space<vmem>>, vector<1x1x4x1xf32>
    %26 = vector.shape_cast %25 : vector<1x1x4x1xf32> to vector<4x1xf32>
    %27 = vector.broadcast %26 : vector<4x1xf32> to vector<4x16xf32>
    %28 = arith.mulf %24, %27 : vector<4x16xf32>
    %29 = arith.addf %15, %28 : vector<4x16xf32>
    %c1_27 = arith.constant 1 : index
    %c1_28 = arith.constant 1 : index
    %c0_29 = arith.constant 0 : index
    %c0_30 = arith.constant 0 : index
    %30 = vector.load %arg3[%c1_27, %c1_28, %c0_29, %c0_30] : memref<3x2x4x1xf32, #tpu.memory_space<vmem>>, vector<1x1x4x1xf32>
    %31 = vector.shape_cast %30 : vector<1x1x4x1xf32> to vector<4x1xf32>
    %32 = vector.broadcast %31 : vector<4x1xf32> to vector<4x16xf32>
    %33 = arith.mulf %24, %32 : vector<4x16xf32>
    %34 = arith.addf %23, %33 : vector<4x16xf32>
    %c0_31 = arith.constant 0 : index
    %c129 = arith.constant 129 : index
    %35 = vector.load %arg6[%c0_31, %c129] : memref<4x256xf32, #tpu.memory_space<vmem>>, vector<4x16xf32>
    %c2 = arith.constant 2 : index
    %c0_32 = arith.constant 0 : index
    %c0_33 = arith.constant 0 : index
    %c0_34 = arith.constant 0 : index
    %36 = vector.load %arg3[%c2, %c0_32, %c0_33, %c0_34] : memref<3x2x4x1xf32, #tpu.memory_space<vmem>>, vector<1x1x4x1xf32>
    %37 = vector.shape_cast %36 : vector<1x1x4x1xf32> to vector<4x1xf32>
    %38 = vector.broadcast %37 : vector<4x1xf32> to vector<4x16xf32>
    %39 = arith.mulf %35, %38 : vector<4x16xf32>
    %40 = arith.addf %29, %39 : vector<4x16xf32>
    %c2_35 = arith.constant 2 : index
    %c1_36 = arith.constant 1 : index
    %c0_37 = arith.constant 0 : index
    %c0_38 = arith.constant 0 : index
    %41 = vector.load %arg3[%c2_35, %c1_36, %c0_37, %c0_38] : memref<3x2x4x1xf32, #tpu.memory_space<vmem>>, vector<1x1x4x1xf32>
    %42 = vector.shape_cast %41 : vector<1x1x4x1xf32> to vector<4x1xf32>
    %43 = vector.broadcast %42 : vector<4x1xf32> to vector<4x16xf32>
    %44 = arith.mulf %35, %43 : vector<4x16xf32>
    %45 = arith.addf %34, %44 : vector<4x16xf32>
    %c0_39 = arith.constant 0 : index
    %c0_40 = arith.constant 0 : index
    %c0_41 = arith.constant 0 : index
    %46 = vector.load %arg5[%c0_39, %c0_40, %c0_41] : memref<1x4x32xf32, #tpu.memory_space<vmem>>, vector<1x4x16xf32>
    %47 = vector.shape_cast %46 : vector<1x4x16xf32> to vector<4x16xf32>
    %48 = vector.shape_cast %40 : vector<4x16xf32> to vector<1x4x16xf32>
    tpu.vector_store %arg5[%c0_39, %c0_40, %c0_41], %48 {strides = array<i32>} : memref<1x4x32xf32, #tpu.memory_space<vmem>>, vector<1x4x16xf32>,
    %c0_42 = arith.constant 0 : index
    %c0_43 = arith.constant 0 : index
    %c16 = arith.constant 16 : index
    %49 = vector.load %arg5[%c0_42, %c0_43, %c16] : memref<1x4x32xf32, #tpu.memory_space<vmem>>, vector<1x4x16xf32>
    %50 = vector.shape_cast %49 : vector<1x4x16xf32> to vector<4x16xf32>
    %51 = vector.shape_cast %45 : vector<4x16xf32> to vector<1x4x16xf32>
    tpu.vector_store %arg5[%c0_42, %c0_43, %c16], %51 {strides = array<i32>} : memref<1x4x32xf32, #tpu.memory_space<vmem>>, vector<1x4x16xf32>,
    return
  }
  func.func @transform_0(%arg0: i32, %arg1: i32) -> (i32, i32, i32) {
    %c0_i32 = arith.constant 0 : i32
    %c0_i32_0 = arith.constant 0 : i32
    return %arg1, %arg0, %c0_i32 : i32, i32, i32
  }
  func.func @transform_1(%arg0: i32, %arg1: i32) -> (i32, i32, i32, i32) {
    %c0_i32 = arith.constant 0 : i32
    %c0_i32_0 = arith.constant 0 : i32
    %c0_i32_1 = arith.constant 0 : i32
    %c0_i32_2 = arith.constant 0 : i32
    return %c0_i32, %c0_i32_0, %arg0, %c0_i32_1 : i32, i32, i32, i32
  }
  func.func @transform_2(%arg0: i32, %arg1: i32) -> (i32, i32, i32) {
    %c0_i32 = arith.constant 0 : i32
    %c0_i32_0 = arith.constant 0 : i32
    %c0_i32_1 = arith.constant 0 : i32
    return %c0_i32, %arg0, %c0_i32_0 : i32, i32, i32
  }
  func.func @transform_3(%arg0: i32, %arg1: i32) -> (i32, i32, i32) {
    %c0_i32 = arith.constant 0 : i32
    %c0_i32_0 = arith.constant 0 : i32
    return %arg1, %arg0, %c0_i32 : i32, i32, i32
  }
}

</mosaic_0001>

<bundles_post_ra>
// kernel: tpu_custom_call.1
= control target key start
LH: loop header
LB: loop body
LE: loop exit
PB: predicated region body
PF: predicated region fallthrough
CT: control target
= control target key end

     0   :  { %8 = vsyncpa [#allocation4], 0  ;;  %s791_s0 = inlined_call_operand.vmem [shape: f32[2,4,16], index: 0, kind: input, shape index: {}]   ;;  %s792_s1 = inlined_call_operand.vmem [shape: f32[3,2,4,1], index: 1, kind: input, shape index: {}]   ;;  %s793_s2 = inlined_call_operand.vmem [shape: f32[2,4,1], index: 2, kind: input, shape index: {}]   ;;  %s794_s3 = inlined_call_operand.hbm [shape: f32[2,4,32], index: 3, kind: output, shape index: {}]  }
   0x1   :  { %10 = vsyncpa [#allocation4 + $0x1], 0  ;;  %s651_s12 = smov 0   ;;  %s653_s13 = smov 0  }
   0x2   :  { %s655_s14 = smov 0   ;;  %s657_s15 = smov 0  }
   0x3   :  { %s659_s16 = smov 0   ;;  %s661_s17 = smov 0  }
   0x4 LB: > { %s462_s18 = sadd.s32 4294967295, %s622_s17   ;;  %s463_s19 = sadd.s32 4294967294, %s622_s17   ;;  %s622_s17 = sphi %s661_s17, %s16_s17   ;;  %s618_s16 = sphi %s659_s16, %s801_s16   ;;  %s614_s15 = sphi %s657_s15, %s800_s15   ;;  %s610_s14 = sphi %s655_s14, %s799_s14   ;;  %s606_s13 = sphi %s653_s13, %s798_s13   ;;  %s602_s12 = sphi %s651_s12, %s797_s12  }
   0x5   : > { %s25_s20 = sadd.s32 1, %s618_s16  ;;  %s117_s21 = sadd.s32 1, %s610_s14 }
   0x6   : > { %p26_p0 = scmp.ge.s32.totalorder %s25_s20, 2  ;;  %p127_p1 = scmp.ne.s32.totalorder %s610_s14, %s606_s13 }
   0x7   : > { %p128_p2 = scmp.eq.s32.totalorder %s462_s18, 1  ;;  %p133_p3 = scmp.ne.s32.totalorder %s606_s13, %s602_s12 }
   0x8   : > { %s803_s20 = smov (%p26_p0, %s25_s20), 0  ;;  %p134_p5 = scmp.eq.s32.totalorder %s463_s19, 1 }
   0x9   : > { %p691_p4 = por %p128_p2, %p127_p1  ;;  %s112_s23 = ssub.s32 %s618_s16, %s803_s20 }
   0xa   : > { %p468_p6 = scmp.ge.s32.totalorder %s622_s17, 1  ;;  %p115_p7 = scmp.eq.s32.totalorder %s112_s23, 0 }
   0xb   : > { %p698_p8 = por %p134_p5, %p133_p3  ;;  %p176_p9 = scmp.lt.s32.totalorder %s622_s17, 3 }
   0xc   : > { %s704_s25 = scalar_select %p115_p7, %s610_s14, %s117_s21  }
   0xd   : > { %p177_p10 = pnand %p468_p6, %p176_p9 }
   0xe   : > { %v475_v0 = vld [vmem:[%s792_s1 + $0x10] sm:$0xf] (!%p177_p10)  ;;  %v473_v1 = vld [vmem:[%s792_s1 + $0x8] sm:$0xf] (!%p177_p10)  ;;  %p210_p11 = scmp.lt.s32.totalorder (!%p177_p10), %s614_s15, 1  ;;  %v624_v2 = vmov (!%p177_p10), 0  }
   0xf   : > { %180 = sbr.rel (%p177_p10) target bundleno = 406 (0x196), region = 32  ;;  %543 = vset.pattern.permute.xlu1 (!%p177_p10), %v624_v2  ;;  %542 = vset.pattern.permute.xlu0 (!%p177_p10), %v624_v2  ;;  %v476_v3 = vld [vmem:[%s792_s1 + $0x14] sm:$0xf] (!%p177_p10)  ;;  %v474_v4 = vld [vmem:[%s792_s1 + $0xc] sm:$0xf] (!%p177_p10)  ;;  %vm226_vm0 = vcmask (!%p177_p10), 1043584  }
  0x10   : > { %298 = vperm.xlu1 (!%p177_p10), %543, %v475_v0   ;;  %267 = vperm.xlu0 (!%p177_p10), %542, %v473_v1   ;;  %v625_v5 = vmov (!%p177_p10), 0.0   ;;  %vm229_vm1 = vcmask (!%p177_p10), 125952   ;;  %v471_v6 = vld [vmem:[%s792_s1 + $0x4] sm:$0xf] (!%p177_p10)  ;;  %v232_v7 = vld [vmem:[%s792_s1] sm:$0xf] (!%p177_p10) }
  0x11   : > { %227 = vst.msk [vmem:[#allocation2 + $0x4] sm:$0xf] (!%p177_p10), %vm226_vm0, %v625_v5  ;;  %225 = vst [vmem:[#allocation2] sm:$0xf] (!%p177_p10), %v625_v5  ;;  %v472_v9 = vld [vmem:[%s793_s2 + $0x4] sm:$0xf] (!%p177_p10) }
  0x12   : > { %v239_v10 = vld [vmem:[%s793_s2] sm:$0xf] (!%p177_p10)  ;;  %s626_s30 = smov (!%p177_p10), 127   ;;  %s627_s4 = smov (!%p177_p10), 126   ;;  %vm275_vm2 = vcmask (!%p177_p10), 1039360   ;;  %vm306_vm3 = vcmask (!%p177_p10), 1031168  }
  0x13   : > { %s628_s5 = smov (!%p177_p10), 1   ;;  %s629_s6 = smov (!%p177_p10), 17   ;;  %vm331_vm4 = vcmask (!%p177_p10), 7168   ;;  %vm341_vm5 = vcmask (!%p177_p10), 138240   ;;  %vm344_vm6 = vcmask (!%p177_p10), 257152  }
  0x14   : > { %314 = vperm.xlu1 (!%p177_p10), %543, %v476_v3   ;;  %283 = vperm.xlu0 (!%p177_p10), %542, %v474_v4   ;;  %s478_s9 = sshll.u32 (!%p177_p10), %s614_s15, 6  ;;  %s630_s26 = smov (!%p177_p10), [#allocation3]  }
  0x15   : > { %s744_s21 = scalar_lea.hbm (!%p177_p10), %s794_s3, %s478_s9  ;;  %s548_s27 = sshll.u32 (!%p177_p10), %s630_s26, 4  ;;  %s549_s27 = int_to_ptr.vmem [resolvable:$false] %s548_s27 }
  0x16   : > { %s211_s7 = scalar_select %p210_p11, %s614_s15, 1 }
  0x17   : > { %s550_s28 = scalar_lea.vmem %s549_s27, 128 }
  0x18   : > { %s470_s8 = sshll.u32 %s211_s7, 2  ;;  %250 = vperm.xlu1 %543, %v471_v6   ;;  %235 = vperm.xlu0 %542, %v232_v7   ;;  %s207_s7 = sand.u32 1, %s606_s13  }
  0x19   : > { %s216_s11 = scalar_lea.vmem %s791_s0, %s470_s8  ;;  %s469_s8 = sshll.u32 %s207_s7, 2 }
  0x1a   : > { %v228_v8 = vld [vmem:[%s216_s11] sm:$0xf]  ;;  %s209_s10 = scalar_lea.vmem [#allocation3], %s469_s8  ;;  %s347_s15 = scalar_lea.sflag [#allocation4], %s207_s7 }
  0x1b   : > { %230 = vst.msk [vmem:[#allocation2 + $0x4] sm:$0xf] %vm229_vm1, %v228_v8  ;;  %s361_s11 = sshll.u32 %s209_s10, 4  ;;  %s746_s11 = int_to_ptr.vmem [resolvable:$true] %s361_s11 }
  0x1c   : > { %258 = vperm.xlu1 %543, %v472_v9   ;;  %242 = vperm.xlu0 %542, %v239_v10   ;;  %s544_s23 = scalar_lea.vmem %s746_s11, 64  ;;  %p551_p1 = scmp.lt.s32.totalorder %s746_s11, %s549_s27 }
  0x1d   : > { %p545_p12 = scmp.ne.s32.totalorder %s746_s11, %s544_s23  ;;  %p552_p2 = scmp.lt.s32.totalorder %s550_s28, %s544_s23 }
  0x1f   : > { %p546_p13 = pnand %p545_p12, %p691_p4  ;;  %p553_p3 = por %p552_p2, %p551_p1 }
  0x21   : > { %p547_p0 = pneg %p546_p13 }
  0x22   : > { %v262_v11 = vld [vmem:[#allocation2 + $0x4] sm:$0xf] }
  0x23   : > { %v231_v23 = vld [vmem:[#allocation2] sm:$0xff]  ;;  %p554_p5 = pnand %p553_p3, %p547_p0 }
  0x8f   : > { %v299_v12 = vpop.permute.xlu1 %298  ;;  %v268_v13 = vpop.permute.xlu0 %267 }
  0x90   : > { %v270_v14 = vmul.f32 %v268_v13, %v262_v11  ;;  %v301_v15 = vmul.f32 %v299_v12, %v262_v11 }
  0x92   : > { %272 = vrot.lane.b32.xlu0 %v270_v14, %s626_s30 }
  0x93   : > { %v284_v16 = vpop.permute.xlu0 %283  ;;  %v315_v18 = vpop.permute.xlu1 %314 }
  0x94   : > { %v286_v17 = vmul.f32 %v284_v16, %v262_v11  ;;  %v317_v19 = vmul.f32 %v315_v18, %v262_v11 }
  0x96   : > { %288 = vrot.lane.b32.xlu1 %v286_v17, %s626_s30  ;;  %303 = vrot.lane.b32.xlu0 %v301_v15, %s627_s4 }
  0x97   : > { %v236_v20 = vpop.permute.xlu0 %235  ;;  %v251_v21 = vpop.permute.xlu1 %250 }
  0x98   : > { %v238_v27 = vmul.f32 %v236_v20, %v231_v23  ;;  %v253_v34 = vmul.f32 %v251_v21, %v231_v23 }
  0x9a   : > { %319 = vrot.lane.b32.xlu1 %v317_v19, %s627_s4 }
  0x9b   : > { %v243_v22 = vpop.permute.xlu0 %242  ;;  %v259_v24 = vpop.permute.xlu1 %258 }
  0x9c   : > { %v245_v29 = vadd.f32 %v243_v22, %v238_v27  ;;  %v261_v38 = vadd.f32 %v259_v24, %v253_v34 }
 0x104   : > { %v273_v25 = vpop.permute.xlu0 %272 }
 0x105   : > { %v274_v26 = vrot.slane %v273_v25, 4 }
 0x107   : > { %v276_v28 = vsel %vm275_vm2, %v274_v26, %v273_v25 }
 0x108   : > { %v289_v30 = vpop.permute.xlu1 %288  ;;  %v304_v31 = vpop.permute.xlu0 %303  ;;  %v278_v35 = vadd.f32 %v276_v28, %v245_v29 }
 0x109   : > { %v290_v32 = vrot.slane %v289_v30, 4  ;;  %v305_v33 = vrot.slane %v304_v31, 4 }
 0x10b   : > { %v291_v36 = vsel %vm275_vm2, %v290_v32, %v289_v30  ;;  %v307_v37 = vsel %vm306_vm3, %v305_v33, %v304_v31 }
 0x10c   : > { %v309_v39 = vadd.f32 %v307_v37, %v278_v35  ;;  %v320_v40 = vpop.permute.xlu1 %319  ;;  %v293_v42 = vadd.f32 %v291_v36, %v261_v38 }
 0x10d   : > { %v321_v41 = vrot.slane %v320_v40, 4 }
 0x10e   : > { %327 = vrot.lane.b32.xlu0 %v309_v39, %s628_s5  ;;  %v326_v43 = vcombine.high %v309_v39, %v309_v39 }
 0x10f   : > { %v322_v44 = vsel %vm306_vm3, %v321_v41, %v320_v40 }
 0x110   : > { %v324_v45 = vadd.f32 %v322_v44, %v293_v42  ;;  %329 = vrot.lane.b32.xlu1 %v326_v43, %s628_s5 }
 0x112   : > { %337 = vrot.lane.b32.xlu0 %v324_v45, %s629_s6  ;;  %v336_v46 = vcombine.high %v324_v45, %v324_v45 }
 0x114   : > { %339 = vrot.lane.b32.xlu1 %v336_v46, %s629_s6 }
 0x180   : > { %v328_v47 = vpop.permute.xlu0 %327 }
 0x182   : > { %v330_v48 = vpop.permute.xlu1 %329 }
 0x183   : > { %v332_v49 = vsel %vm331_vm4, %v328_v47, %v330_v48 }
 0x184   : > { %334 = vst.msk [vmem:[%s209_s10] sm:$0xf] %vm229_vm1, %v332_v49  ;;  %v338_v50 = vpop.permute.xlu0 %337 }
 0x186   : > { %v340_v51 = vpop.permute.xlu1 %339 }
 0x187   : > { %v342_v52 = vsel %vm341_vm5, %v338_v50, %v340_v51 }
 0x188   : > { %345 = vst.msk [vmem:[%s209_s10] sm:$0xf] %vm344_vm6, %v342_v52 }
 0x189   : > { %557 = shalt.err (!%p554_p5)
}
 0x18a   : > { %s558_s29 = scalar_lea.hbm %s744_s21, 64  ;;  %s562_s5 = scalar_lea.hbm %s794_s3, 128 }
 0x18b   : > { %p559_p6 = scmp.ne.s32.totalorder %s744_s21, %s558_s29  ;;  %p563_p10 = scmp.lt.u32.totalorder %s744_s21, %s794_s3 }
 0x18c   : > { %p564_p11 = scmp.lt.u32.totalorder %s562_s5, %s558_s29  ;;  %p566_p13 = scmp.lt.u32.totalorder %s558_s29, %s744_s21 }
 0x18d   : > { %p560_p7 = pnand %p559_p6, %p691_p4 }
 0x18e   : > { %p565_p12 = por %p564_p11, %p563_p10 }
 0x18f   : > { %p561_p9 = pneg %p560_p7 }
 0x190   : > { %p567_p0 = por %p566_p13, %p565_p12 }
 0x192   : > { %p568_p1 = pnand %p567_p0, %p561_p9 }
 0x194   : > { %571 = shalt.err (!%p568_p1)
}
 0x195   : > { %481 = dma.vmem_to_hbm [thread:$0]  (%p691_p4), %s746_s11, 64, %s744_s21, %s347_s15  }
 0x196 PF: > { %p487_p2 = scmp.ge.s32.totalorder %s622_s17, 2  ;;  %s373_s8 = sand.u32 1, %s602_s12  }
 0x197   : > { %s374_s9 = scalar_lea.sflag [#allocation4], %s373_s8 }
 0x198   : > { %p484_p3 = pnand %p487_p2, %p698_p8 }
 0x19a   : > { %597 = dma.done.wait (!%p484_p3), %s374_s9, 64  }
 0x19b   : > { %599 = vsyncadd (!%p484_p3), %s374_s9, 4294967232  ;;  %s16_s17 = sadd.s32 1, %s622_s17   ;;  %s797_s12 = smov %s606_s13 }
 0x19c   : > { %p13_p5 = scmp.ge.s32.totalorder %s16_s17, 4   ;;  %s798_s13 = smov %s610_s14 }
 0x19d   : > { %s799_s14 = smov %s704_s25  ;;  %s800_s15 = smov %s618_s16 }
 0x19e   : > { %s801_s16 = smov %s803_s20  ;;  %15 = sbr.rel (!%p13_p5) target bundleno = 4 (0x4), region = 79 }
 0x1a5   :  { %379 = vsyncpa [#allocation4], 1 }
 0x1a6   :  { %381 = vsyncpa [#allocation4 + $0x1], 1 }

</bundles_post_ra>
